<compile_context>
chip_gen: v6e
topology: v6e:2x2x1
jax: 0.10.0
libtpu: 0.0.40
codegen_flags: <defaults>
</compile_context>

<pallas_src>
import math

import jax
import jax.numpy as jnp
from jax.experimental import pallas as pl
from jax.experimental.pallas import tpu as pltpu


# ---------------------------------------------------------------------------
# Model hyper-parameters (small, consistent with the module's forward)
# ---------------------------------------------------------------------------
B = 2          # batch
S = 8          # sequence length
D = 32         # d_model
H = 4          # num_heads
DEPTH = D // H # per-head depth
DFF = 64       # feed-forward hidden dim
EPS = 1e-5     # nn.LayerNorm default eps


def _layernorm(x, gamma, beta):
    mean = jnp.mean(x, axis=-1, keepdims=True)
    var = jnp.mean((x - mean) ** 2, axis=-1, keepdims=True)
    return (x - mean) * jax.lax.rsqrt(var + EPS) * gamma + beta


def encoder_layer_kernel(
    xh_ref,    # (B*H, S, DEPTH)  pre-split heads (q = k = v)
    x_ref,     # (B, S, D)        residual stream
    mask_ref,  # (S, S)
    wdh_ref,   # (H, DEPTH, D)    dense.weight grouped per head
    w1_ref,    # (D, DFF)
    w2_ref,    # (DFF, D)
    prm_ref,   # (8, 128)         packed: bd, b1, b2, g1, be1, g2, be2
    out_ref,   # (B, S, D)
):
    xh = xh_ref[...]
    x = x_ref[...]
    mask = mask_ref[...]
    wdh = wdh_ref[...]
    w1 = w1_ref[...]
    w2 = w2_ref[...]
    prm = prm_ref[...]

    bd = prm[0:1, 0:D]
    b1 = prm[1:2, 0:DFF]
    b2 = prm[2:3, 0:D]
    g1 = prm[3:4, 0:D]
    be1 = prm[4:5, 0:D]
    g2 = prm[5:6, 0:D]
    be2 = prm[6:7, 0:D]

    # ---- multi-head attention, all (batch, head) pairs batched at once ----
    inv_sqrt_dk = 1.0 / math.sqrt(DEPTH)
    scores = jnp.einsum("nqd,nkd->nqk", xh, xh,
                        preferred_element_type=jnp.float32)        # [BH,S,S]
    scores = scores * inv_sqrt_dk + mask * (-1e-09)  # verbatim from PyTorch spec
    scores = scores - jnp.max(scores, axis=-1, keepdims=True)
    p = jnp.exp(scores)
    # exact reciprocal (approx=True risks the 1e-5 tolerance check)
    p = p * pl.reciprocal(jnp.sum(p, axis=-1, keepdims=True), approx=False)
    ho = jnp.einsum("nqk,nkd->nqd", p, xh,
                    preferred_element_type=jnp.float32)            # [BH,S,DEPTH]

    # ---- per-batch tail: concat-free dense projection, LN, FFN, LN ----
    for b in range(B):
        # dense(concat(heads)) == sum_h head_h @ wd[h*DEPTH:(h+1)*DEPTH, :]
        attn = bd                                                   # [1, D]
        for h in range(H):
            attn = attn + jnp.dot(ho[b * H + h], wdh[h],
                                  preferred_element_type=jnp.float32)

        # residual + layer norm 1 (dropout1 == identity)
        out1 = _layernorm(attn + x[b], g1, be1)                     # [S, D]

        # feed-forward (dropout == identity)
        hdn = jnp.maximum(
            jnp.dot(out1, w1, preferred_element_type=jnp.float32) + b1, 0.0)
        ffn = jnp.dot(hdn, w2, preferred_element_type=jnp.float32) + b2

        # residual + layer norm 2 (dropout2 == identity)
        out_ref[b] = _layernorm(ffn + out1, g2, be2)


def encoder_layer(x, mask, params):
    """x: [B, S, D], mask: [S, S] (broadcast over batch/heads)."""
    wd, bd, w1, b1, w2, b2, g1, be1, g2, be2 = params

    # Wrapper-side head split so the kernel never slices lanes at
    # non-128-aligned offsets: [B, S, D] -> [B*H, S, DEPTH].
    xh = x.reshape(B, S, H, DEPTH).transpose(0, 2, 1, 3).reshape(B * H, S, DEPTH)
    # dense.weight rows grouped per head: [H, DEPTH, D].
    wdh = wd.reshape(H, DEPTH, D)

    # Pack the 7 tiny per-channel vectors into a single (8, 128) tile -> 1 DMA.
    prm = jnp.zeros((8, 128), jnp.float32)
    prm = prm.at[0, :D].set(bd[0])
    prm = prm.at[1, :DFF].set(b1[0])
    prm = prm.at[2, :D].set(b2[0])
    prm = prm.at[3, :D].set(g1[0])
    prm = prm.at[4, :D].set(be1[0])
    prm = prm.at[5, :D].set(g2[0])
    prm = prm.at[6, :D].set(be2[0])

    full = lambda shape: pl.BlockSpec(shape, lambda i: tuple(0 for _ in shape))
    grid_spec = pltpu.PrefetchScalarGridSpec(
        num_scalar_prefetch=0,
        grid=(1,),                       # single step: batch folded into body
        in_specs=[
            full((B * H, S, DEPTH)),     # xh
            full((B, S, D)),             # x
            full((S, S)),                # mask
            full((H, DEPTH, D)),         # dense weight (per-head blocks)
            full((D, DFF)),              # linear1 weight
            full((DFF, D)),              # linear2 weight
            full((8, 128)),              # packed biases / LN params
        ],
        out_specs=full((B, S, D)),
    )
    return pl.pallas_call(
        encoder_layer_kernel,
        out_shape=jax.ShapeDtypeStruct((B, S, D), jnp.float32),
        grid_spec=grid_spec,
        compiler_params=pltpu.CompilerParams(dimension_semantics=("arbitrary",)),
    )(xh, x, mask, wdh, w1, w2, prm)


# ---------------------------------------------------------------------------
# Pure-JAX reference (mirrors the PyTorch forward exactly, eval mode)
# ---------------------------------------------------------------------------
def encoder_layer_ref(x, mask, params):
    wd, bd, w1, b1, w2, b2, g1, be1, g2, be2 = params
    # split heads: [B, S, D] -> [B, H, S, depth]
    q = x.reshape(B, S, H, DEPTH).transpose(0, 2, 1, 3)
    scores = jnp.einsum("bhqd,bhkd->bhqk", q, q) / math.sqrt(DEPTH)
    scores = scores + mask[None, None] * (-1e-09)
    p = jax.nn.softmax(scores, axis=-1)
    attn = jnp.einsum("bhqk,bhkd->bhqd", p, q)
    attn = attn.transpose(0, 2, 1, 3).reshape(B, S, D)
    attn = attn @ wd + bd
    out1 = _layernorm(attn + x, g1, be1)
    ffn = jnp.maximum(out1 @ w1 + b1, 0.0) @ w2 + b2
    return _layernorm(ffn + out1, g2, be2)


if __name__ == "__main__":
    key = jax.random.PRNGKey(0)
    keys = jax.random.split(key, 8)

    x = jax.random.normal(keys[0], (B, S, D), dtype=jnp.float32)
    # padding-style mask (1 where masked); broadcast over batch & heads
    mask = (jax.random.uniform(keys[1], (S, S)) > 0.8).astype(jnp.float32)

    scale = 0.1
    params = (
        jax.random.normal(keys[2], (D, D), jnp.float32) * scale,    # dense W
        jax.random.normal(keys[3], (1, D), jnp.float32) * scale,    # dense b
        jax.random.normal(keys[4], (D, DFF), jnp.float32) * scale,  # linear1 W
        jax.random.normal(keys[5], (1, DFF), jnp.float32) * scale,  # linear1 b
        jax.random.normal(keys[6], (DFF, D), jnp.float32) * scale,  # linear2 W
        jax.random.normal(keys[7], (1, D), jnp.float32) * scale,    # linear2 b
        jnp.ones((1, D), jnp.float32),   # LN1 gamma
        jnp.zeros((1, D), jnp.float32),  # LN1 beta
        jnp.ones((1, D), jnp.float32),   # LN2 gamma
        jnp.zeros((1, D), jnp.float32),  # LN2 beta
    )

    encoder_layer_jit = jax.jit(encoder_layer)
    out = jax.block_until_ready(encoder_layer_jit(x, mask, params))
    ref = jax.block_until_ready(encoder_layer_ref(x, mask, params))

    assert out.shape == (B, S, D)
    assert jnp.allclose(out, ref, atol=1e-5, rtol=1e-5), "mismatch vs reference"
    print("KERNEL_OK")
</pallas_src>

<mosaic_0001>
module attributes {stable_mosaic.version = 11 : i64} {
  func.func @encoder_layer_kernel(%arg0: i32, %arg1: memref<8x8x8xf32, #tpu.memory_space<vmem>>, %arg2: memref<2x8x32xf32, #tpu.memory_space<vmem>>, %arg3: memref<8x8xf32, #tpu.memory_space<vmem>>, %arg4: memref<4x8x32xf32, #tpu.memory_space<vmem>>, %arg5: memref<32x64xf32, #tpu.memory_space<vmem>>, %arg6: memref<64x32xf32, #tpu.memory_space<vmem>>, %arg7: memref<8x128xf32, #tpu.memory_space<vmem>>, %arg8: memref<2x8x32xf32, #tpu.memory_space<vmem>>) attributes {dimension_semantics = [#tpu.dimension_semantics<arbitrary>], iteration_bounds = array<i64: 1>, scalar_prefetch = 0 : i64, scratch_operands = 0 : i64, tpu.core_type = #tpu.core_type<tc>, window_params = [{pipeline_mode = #tpu.pipeline_mode<synchronous>, transform_indices = @transform_0, window_bounds = array<i64: 8, 8, 8>}, {pipeline_mode = #tpu.pipeline_mode<synchronous>, transform_indices = @transform_1, window_bounds = array<i64: 2, 8, 32>}, {pipeline_mode = #tpu.pipeline_mode<synchronous>, transform_indices = @transform_2, window_bounds = array<i64: 8, 8>}, {pipeline_mode = #tpu.pipeline_mode<synchronous>, transform_indices = @transform_3, window_bounds = array<i64: 4, 8, 32>}, {pipeline_mode = #tpu.pipeline_mode<synchronous>, transform_indices = @transform_4, window_bounds = array<i64: 32, 64>}, {pipeline_mode = #tpu.pipeline_mode<synchronous>, transform_indices = @transform_5, window_bounds = array<i64: 64, 32>}, {pipeline_mode = #tpu.pipeline_mode<synchronous>, transform_indices = @transform_6, window_bounds = array<i64: 8, 128>}, {pipeline_mode = #tpu.pipeline_mode<synchronous>, transform_indices = @transform_7, window_bounds = array<i64: 2, 8, 32>}]} {
    %c0 = arith.constant 0 : index
    %c0_0 = arith.constant 0 : index
    %c0_1 = arith.constant 0 : index
    %0 = vector.load %arg1[%c0, %c0_0, %c0_1] : memref<8x8x8xf32, #tpu.memory_space<vmem>>, vector<8x8x8xf32>
    %c0_2 = arith.constant 0 : index
    %c0_3 = arith.constant 0 : index
    %c0_4 = arith.constant 0 : index
    %1 = vector.load %arg2[%c0_2, %c0_3, %c0_4] : memref<2x8x32xf32, #tpu.memory_space<vmem>>, vector<2x8x32xf32>
    %c0_5 = arith.constant 0 : index
    %c0_6 = arith.constant 0 : index
    %2 = vector.load %arg3[%c0_5, %c0_6] : memref<8x8xf32, #tpu.memory_space<vmem>>, vector<8x8xf32>
    %c0_7 = arith.constant 0 : index
    %c0_8 = arith.constant 0 : index
    %c0_9 = arith.constant 0 : index
    %3 = vector.load %arg4[%c0_7, %c0_8, %c0_9] : memref<4x8x32xf32, #tpu.memory_space<vmem>>, vector<4x8x32xf32>
    %c0_10 = arith.constant 0 : index
    %c0_11 = arith.constant 0 : index
    %4 = vector.load %arg5[%c0_10, %c0_11] : memref<32x64xf32, #tpu.memory_space<vmem>>, vector<32x64xf32>
    %c0_12 = arith.constant 0 : index
    %c0_13 = arith.constant 0 : index
    %5 = vector.load %arg6[%c0_12, %c0_13] : memref<64x32xf32, #tpu.memory_space<vmem>>, vector<64x32xf32>
    %c0_14 = arith.constant 0 : index
    %c0_15 = arith.constant 0 : index
    %6 = vector.load %arg7[%c0_14, %c0_15] : memref<8x128xf32, #tpu.memory_space<vmem>>, vector<8x128xf32>
    %7 = vector.extract_strided_slice %6 {offsets = [0, 0], sizes = [1, 32], strides = [1, 1]} : vector<8x128xf32> to vector<1x32xf32>
    %8 = vector.extract_strided_slice %6 {offsets = [1, 0], sizes = [1, 64], strides = [1, 1]} : vector<8x128xf32> to vector<1x64xf32>
    %9 = vector.extract_strided_slice %6 {offsets = [2, 0], sizes = [1, 32], strides = [1, 1]} : vector<8x128xf32> to vector<1x32xf32>
    %10 = vector.extract_strided_slice %6 {offsets = [3, 0], sizes = [1, 32], strides = [1, 1]} : vector<8x128xf32> to vector<1x32xf32>
    %11 = vector.extract_strided_slice %6 {offsets = [4, 0], sizes = [1, 32], strides = [1, 1]} : vector<8x128xf32> to vector<1x32xf32>
    %12 = vector.extract_strided_slice %6 {offsets = [5, 0], sizes = [1, 32], strides = [1, 1]} : vector<8x128xf32> to vector<1x32xf32>
    %13 = vector.extract_strided_slice %6 {offsets = [6, 0], sizes = [1, 32], strides = [1, 1]} : vector<8x128xf32> to vector<1x32xf32>
    "tpu.trace_start"() <{level = 10 : i32, message = "nqd,nkd->nqk"}> : () -> ()
    %cst = arith.constant dense<0.000000e+00> : vector<8x8x8xf32>
    %14 = tpu.matmul %0, %0, %cst {dimension_numbers = #tpu.dot_dimension_numbers<[2], [2], [1], [1], [0, 0, 0, 1, 1, 1], [0], [0]>} : vector<8x8x8xf32>, vector<8x8x8xf32>, vector<8x8x8xf32> -> vector<8x8x8xf32>
    "tpu.trace_stop"() : () -> ()
    %cst_16 = arith.constant 0.353553385 : f32
    %15 = vector.broadcast %cst_16 : f32 to vector<8x8x8xf32>
    %16 = arith.mulf %14, %15 : vector<8x8x8xf32>
    %cst_17 = arith.constant -9.99999971E-10 : f32
    %17 = vector.broadcast %cst_17 : f32 to vector<8x8xf32>
    %18 = arith.mulf %2, %17 : vector<8x8xf32>
    %19 = vector.shape_cast %18 : vector<8x8xf32> to vector<1x8x8xf32>
    %20 = vector.broadcast %19 : vector<1x8x8xf32> to vector<8x8x8xf32>
    %21 = arith.addf %16, %20 : vector<8x8x8xf32>
    %cst_18 = arith.constant dense<0xFF800000> : vector<8x8xf32>
    %22 = vector.multi_reduction <maximumf>, %21, %cst_18 [2] : vector<8x8x8xf32> to vector<8x8xf32>
    %23 = vector.shape_cast %22 : vector<8x8xf32> to vector<8x8x1xf32>
    %24 = vector.broadcast %23 : vector<8x8x1xf32> to vector<8x8x8xf32>
    %25 = arith.subf %21, %24 : vector<8x8x8xf32>
    %26 = math.exp %25 : vector<8x8x8xf32>
    %cst_19 = arith.constant dense<0.000000e+00> : vector<8x8xf32>
    %27 = vector.multi_reduction <add>, %26, %cst_19 [2] : vector<8x8x8xf32> to vector<8x8xf32>
    %28 = vector.shape_cast %27 : vector<8x8xf32> to vector<8x8x1xf32>
    %29 = tpu.reciprocal %28 : vector<8x8x1xf32> -> vector<8x8x1xf32>
    %30 = vector.broadcast %29 : vector<8x8x1xf32> to vector<8x8x8xf32>
    %31 = arith.mulf %26, %30 : vector<8x8x8xf32>
    "tpu.trace_start"() <{level = 10 : i32, message = "nqk,nkd->nqd"}> : () -> ()
    %cst_20 = arith.constant dense<0.000000e+00> : vector<8x8x8xf32>
    %32 = tpu.matmul %31, %0, %cst_20 {dimension_numbers = #tpu.dot_dimension_numbers<[2], [1], [1], [2], [0, 0, 0, 1, 1, 2], [0], [0]>} : vector<8x8x8xf32>, vector<8x8x8xf32>, vector<8x8x8xf32> -> vector<8x8x8xf32>
    "tpu.trace_stop"() : () -> ()
    %33 = vector.extract_strided_slice %32 {offsets = [0, 0, 0], sizes = [1, 8, 8], strides = [1, 1, 1]} : vector<8x8x8xf32> to vector<1x8x8xf32>
    %34 = vector.shape_cast %33 : vector<1x8x8xf32> to vector<8x8xf32>
    %35 = vector.extract_strided_slice %3 {offsets = [0, 0, 0], sizes = [1, 8, 32], strides = [1, 1, 1]} : vector<4x8x32xf32> to vector<1x8x32xf32>
    %36 = vector.shape_cast %35 : vector<1x8x32xf32> to vector<8x32xf32>
    %cst_21 = arith.constant dense<0.000000e+00> : vector<8x32xf32>
    %37 = tpu.matmul %34, %36, %cst_21 {dimension_numbers = #tpu.dot_dimension_numbers<[1], [0], [0], [1], [0, 0, 1, 1], [], []>} : vector<8x8xf32>, vector<8x32xf32>, vector<8x32xf32> -> vector<8x32xf32>
    %38 = vector.broadcast %7 : vector<1x32xf32> to vector<8x32xf32>
    %39 = arith.addf %38, %37 : vector<8x32xf32>
    %40 = vector.extract_strided_slice %32 {offsets = [1, 0, 0], sizes = [1, 8, 8], strides = [1, 1, 1]} : vector<8x8x8xf32> to vector<1x8x8xf32>
    %41 = vector.shape_cast %40 : vector<1x8x8xf32> to vector<8x8xf32>
    %42 = vector.extract_strided_slice %3 {offsets = [1, 0, 0], sizes = [1, 8, 32], strides = [1, 1, 1]} : vector<4x8x32xf32> to vector<1x8x32xf32>
    %43 = vector.shape_cast %42 : vector<1x8x32xf32> to vector<8x32xf32>
    %cst_22 = arith.constant dense<0.000000e+00> : vector<8x32xf32>
    %44 = tpu.matmul %41, %43, %cst_22 {dimension_numbers = #tpu.dot_dimension_numbers<[1], [0], [0], [1], [0, 0, 1, 1], [], []>} : vector<8x8xf32>, vector<8x32xf32>, vector<8x32xf32> -> vector<8x32xf32>
    %45 = arith.addf %39, %44 : vector<8x32xf32>
    %46 = vector.extract_strided_slice %32 {offsets = [2, 0, 0], sizes = [1, 8, 8], strides = [1, 1, 1]} : vector<8x8x8xf32> to vector<1x8x8xf32>
    %47 = vector.shape_cast %46 : vector<1x8x8xf32> to vector<8x8xf32>
    %48 = vector.extract_strided_slice %3 {offsets = [2, 0, 0], sizes = [1, 8, 32], strides = [1, 1, 1]} : vector<4x8x32xf32> to vector<1x8x32xf32>
    %49 = vector.shape_cast %48 : vector<1x8x32xf32> to vector<8x32xf32>
    %cst_23 = arith.constant dense<0.000000e+00> : vector<8x32xf32>
    %50 = tpu.matmul %47, %49, %cst_23 {dimension_numbers = #tpu.dot_dimension_numbers<[1], [0], [0], [1], [0, 0, 1, 1], [], []>} : vector<8x8xf32>, vector<8x32xf32>, vector<8x32xf32> -> vector<8x32xf32>
    %51 = arith.addf %45, %50 : vector<8x32xf32>
    %52 = vector.extract_strided_slice %32 {offsets = [3, 0, 0], sizes = [1, 8, 8], strides = [1, 1, 1]} : vector<8x8x8xf32> to vector<1x8x8xf32>
    %53 = vector.shape_cast %52 : vector<1x8x8xf32> to vector<8x8xf32>
    %54 = vector.extract_strided_slice %3 {offsets = [3, 0, 0], sizes = [1, 8, 32], strides = [1, 1, 1]} : vector<4x8x32xf32> to vector<1x8x32xf32>
    %55 = vector.shape_cast %54 : vector<1x8x32xf32> to vector<8x32xf32>
    %cst_24 = arith.constant dense<0.000000e+00> : vector<8x32xf32>
    %56 = tpu.matmul %53, %55, %cst_24 {dimension_numbers = #tpu.dot_dimension_numbers<[1], [0], [0], [1], [0, 0, 1, 1], [], []>} : vector<8x8xf32>, vector<8x32xf32>, vector<8x32xf32> -> vector<8x32xf32>
    %57 = arith.addf %51, %56 : vector<8x32xf32>
    %58 = vector.extract_strided_slice %1 {offsets = [0, 0, 0], sizes = [1, 8, 32], strides = [1, 1, 1]} : vector<2x8x32xf32> to vector<1x8x32xf32>
    %59 = vector.shape_cast %58 : vector<1x8x32xf32> to vector<8x32xf32>
    %60 = arith.addf %57, %59 : vector<8x32xf32>
    %cst_25 = arith.constant dense<0.000000e+00> : vector<8xf32>
    %61 = vector.multi_reduction <add>, %60, %cst_25 [1] : vector<8x32xf32> to vector<8xf32>
    %62 = vector.shape_cast %61 : vector<8xf32> to vector<8x1xf32>
    %cst_26 = arith.constant 3.200000e+01 : f32
    %63 = vector.broadcast %cst_26 : f32 to vector<8x1xf32>
    %64 = arith.divf %62, %63 : vector<8x1xf32>
    %65 = vector.broadcast %64 : vector<8x1xf32> to vector<8x32xf32>
    %66 = arith.subf %60, %65 : vector<8x32xf32>
    %67 = arith.mulf %66, %66 : vector<8x32xf32>
    %cst_27 = arith.constant dense<0.000000e+00> : vector<8xf32>
    %68 = vector.multi_reduction <add>, %67, %cst_27 [1] : vector<8x32xf32> to vector<8xf32>
    %69 = vector.shape_cast %68 : vector<8xf32> to vector<8x1xf32>
    %cst_28 = arith.constant 3.200000e+01 : f32
    %70 = vector.broadcast %cst_28 : f32 to vector<8x1xf32>
    %71 = arith.divf %69, %70 : vector<8x1xf32>
    %72 = vector.broadcast %64 : vector<8x1xf32> to vector<8x32xf32>
    %73 = arith.subf %60, %72 : vector<8x32xf32>
    %cst_29 = arith.constant 9.99999974E-6 : f32
    %74 = vector.broadcast %cst_29 : f32 to vector<8x1xf32>
    %75 = arith.addf %71, %74 : vector<8x1xf32>
    %76 = math.rsqrt %75 : vector<8x1xf32>
    %77 = vector.broadcast %76 : vector<8x1xf32> to vector<8x32xf32>
    %78 = arith.mulf %73, %77 : vector<8x32xf32>
    %79 = vector.broadcast %10 : vector<1x32xf32> to vector<8x32xf32>
    %80 = arith.mulf %78, %79 : vector<8x32xf32>
    %81 = vector.broadcast %11 : vector<1x32xf32> to vector<8x32xf32>
    %82 = arith.addf %80, %81 : vector<8x32xf32>
    %cst_30 = arith.constant dense<0.000000e+00> : vector<8x64xf32>
    %83 = tpu.matmul %82, %4, %cst_30 {dimension_numbers = #tpu.dot_dimension_numbers<[1], [0], [0], [1], [0, 0, 1, 1], [], []>} : vector<8x32xf32>, vector<32x64xf32>, vector<8x64xf32> -> vector<8x64xf32>
    %84 = vector.broadcast %8 : vector<1x64xf32> to vector<8x64xf32>
    %85 = arith.addf %83, %84 : vector<8x64xf32>
    %cst_31 = arith.constant 0.000000e+00 : f32
    %86 = vector.broadcast %cst_31 : f32 to vector<8x64xf32>
    %87 = arith.maximumf %85, %86 : vector<8x64xf32>
    %cst_32 = arith.constant dense<0.000000e+00> : vector<8x32xf32>
    %88 = tpu.matmul %87, %5, %cst_32 {dimension_numbers = #tpu.dot_dimension_numbers<[1], [0], [0], [1], [0, 0, 1, 1], [], []>} : vector<8x64xf32>, vector<64x32xf32>, vector<8x32xf32> -> vector<8x32xf32>
    %89 = vector.broadcast %9 : vector<1x32xf32> to vector<8x32xf32>
    %90 = arith.addf %88, %89 : vector<8x32xf32>
    %91 = arith.addf %90, %82 : vector<8x32xf32>
    %cst_33 = arith.constant dense<0.000000e+00> : vector<8xf32>
    %92 = vector.multi_reduction <add>, %91, %cst_33 [1] : vector<8x32xf32> to vector<8xf32>
    %93 = vector.shape_cast %92 : vector<8xf32> to vector<8x1xf32>
    %cst_34 = arith.constant 3.200000e+01 : f32
    %94 = vector.broadcast %cst_34 : f32 to vector<8x1xf32>
    %95 = arith.divf %93, %94 : vector<8x1xf32>
    %96 = vector.broadcast %95 : vector<8x1xf32> to vector<8x32xf32>
    %97 = arith.subf %91, %96 : vector<8x32xf32>
    %98 = arith.mulf %97, %97 : vector<8x32xf32>
    %cst_35 = arith.constant dense<0.000000e+00> : vector<8xf32>
    %99 = vector.multi_reduction <add>, %98, %cst_35 [1] : vector<8x32xf32> to vector<8xf32>
    %100 = vector.shape_cast %99 : vector<8xf32> to vector<8x1xf32>
    %cst_36 = arith.constant 3.200000e+01 : f32
    %101 = vector.broadcast %cst_36 : f32 to vector<8x1xf32>
    %102 = arith.divf %100, %101 : vector<8x1xf32>
    %103 = vector.broadcast %95 : vector<8x1xf32> to vector<8x32xf32>
    %104 = arith.subf %91, %103 : vector<8x32xf32>
    %cst_37 = arith.constant 9.99999974E-6 : f32
    %105 = vector.broadcast %cst_37 : f32 to vector<8x1xf32>
    %106 = arith.addf %102, %105 : vector<8x1xf32>
    %107 = math.rsqrt %106 : vector<8x1xf32>
    %108 = vector.broadcast %107 : vector<8x1xf32> to vector<8x32xf32>
    %109 = arith.mulf %104, %108 : vector<8x32xf32>
    %110 = vector.broadcast %12 : vector<1x32xf32> to vector<8x32xf32>
    %111 = arith.mulf %109, %110 : vector<8x32xf32>
    %112 = vector.broadcast %13 : vector<1x32xf32> to vector<8x32xf32>
    %113 = arith.addf %111, %112 : vector<8x32xf32>
    %c0_38 = arith.constant 0 : index
    %c0_39 = arith.constant 0 : index
    %c0_40 = arith.constant 0 : index
    %114 = vector.load %arg8[%c0_38, %c0_39, %c0_40] : memref<2x8x32xf32, #tpu.memory_space<vmem>>, vector<1x8x32xf32>
    %115 = vector.shape_cast %114 : vector<1x8x32xf32> to vector<8x32xf32>
    %116 = vector.shape_cast %113 : vector<8x32xf32> to vector<1x8x32xf32>
    tpu.vector_store %arg8[%c0_38, %c0_39, %c0_40], %116 {strides = array<i32>} : memref<2x8x32xf32, #tpu.memory_space<vmem>>, vector<1x8x32xf32>,
    %117 = vector.extract_strided_slice %32 {offsets = [4, 0, 0], sizes = [1, 8, 8], strides = [1, 1, 1]} : vector<8x8x8xf32> to vector<1x8x8xf32>
    %118 = vector.shape_cast %117 : vector<1x8x8xf32> to vector<8x8xf32>
    %119 = vector.extract_strided_slice %3 {offsets = [0, 0, 0], sizes = [1, 8, 32], strides = [1, 1, 1]} : vector<4x8x32xf32> to vector<1x8x32xf32>
    %120 = vector.shape_cast %119 : vector<1x8x32xf32> to vector<8x32xf32>
    %cst_41 = arith.constant dense<0.000000e+00> : vector<8x32xf32>
    %121 = tpu.matmul %118, %120, %cst_41 {dimension_numbers = #tpu.dot_dimension_numbers<[1], [0], [0], [1], [0, 0, 1, 1], [], []>} : vector<8x8xf32>, vector<8x32xf32>, vector<8x32xf32> -> vector<8x32xf32>
    %122 = vector.broadcast %7 : vector<1x32xf32> to vector<8x32xf32>
    %123 = arith.addf %122, %121 : vector<8x32xf32>
    %124 = vector.extract_strided_slice %32 {offsets = [5, 0, 0], sizes = [1, 8, 8], strides = [1, 1, 1]} : vector<8x8x8xf32> to vector<1x8x8xf32>
    %125 = vector.shape_cast %124 : vector<1x8x8xf32> to vector<8x8xf32>
    %126 = vector.extract_strided_slice %3 {offsets = [1, 0, 0], sizes = [1, 8, 32], strides = [1, 1, 1]} : vector<4x8x32xf32> to vector<1x8x32xf32>
    %127 = vector.shape_cast %126 : vector<1x8x32xf32> to vector<8x32xf32>
    %cst_42 = arith.constant dense<0.000000e+00> : vector<8x32xf32>
    %128 = tpu.matmul %125, %127, %cst_42 {dimension_numbers = #tpu.dot_dimension_numbers<[1], [0], [0], [1], [0, 0, 1, 1], [], []>} : vector<8x8xf32>, vector<8x32xf32>, vector<8x32xf32> -> vector<8x32xf32>
    %129 = arith.addf %123, %128 : vector<8x32xf32>
    %130 = vector.extract_strided_slice %32 {offsets = [6, 0, 0], sizes = [1, 8, 8], strides = [1, 1, 1]} : vector<8x8x8xf32> to vector<1x8x8xf32>
    %131 = vector.shape_cast %130 : vector<1x8x8xf32> to vector<8x8xf32>
    %132 = vector.extract_strided_slice %3 {offsets = [2, 0, 0], sizes = [1, 8, 32], strides = [1, 1, 1]} : vector<4x8x32xf32> to vector<1x8x32xf32>
    %133 = vector.shape_cast %132 : vector<1x8x32xf32> to vector<8x32xf32>
    %cst_43 = arith.constant dense<0.000000e+00> : vector<8x32xf32>
    %134 = tpu.matmul %131, %133, %cst_43 {dimension_numbers = #tpu.dot_dimension_numbers<[1], [0], [0], [1], [0, 0, 1, 1], [], []>} : vector<8x8xf32>, vector<8x32xf32>, vector<8x32xf32> -> vector<8x32xf32>
    %135 = arith.addf %129, %134 : vector<8x32xf32>
    %136 = vector.extract_strided_slice %32 {offsets = [7, 0, 0], sizes = [1, 8, 8], strides = [1, 1, 1]} : vector<8x8x8xf32> to vector<1x8x8xf32>
    %137 = vector.shape_cast %136 : vector<1x8x8xf32> to vector<8x8xf32>
    %138 = vector.extract_strided_slice %3 {offsets = [3, 0, 0], sizes = [1, 8, 32], strides = [1, 1, 1]} : vector<4x8x32xf32> to vector<1x8x32xf32>
    %139 = vector.shape_cast %138 : vector<1x8x32xf32> to vector<8x32xf32>
    %cst_44 = arith.constant dense<0.000000e+00> : vector<8x32xf32>
    %140 = tpu.matmul %137, %139, %cst_44 {dimension_numbers = #tpu.dot_dimension_numbers<[1], [0], [0], [1], [0, 0, 1, 1], [], []>} : vector<8x8xf32>, vector<8x32xf32>, vector<8x32xf32> -> vector<8x32xf32>
    %141 = arith.addf %135, %140 : vector<8x32xf32>
    %142 = vector.extract_strided_slice %1 {offsets = [1, 0, 0], sizes = [1, 8, 32], strides = [1, 1, 1]} : vector<2x8x32xf32> to vector<1x8x32xf32>
    %143 = vector.shape_cast %142 : vector<1x8x32xf32> to vector<8x32xf32>
    %144 = arith.addf %141, %143 : vector<8x32xf32>
    %cst_45 = arith.constant dense<0.000000e+00> : vector<8xf32>
    %145 = vector.multi_reduction <add>, %144, %cst_45 [1] : vector<8x32xf32> to vector<8xf32>
    %146 = vector.shape_cast %145 : vector<8xf32> to vector<8x1xf32>
    %cst_46 = arith.constant 3.200000e+01 : f32
    %147 = vector.broadcast %cst_46 : f32 to vector<8x1xf32>
    %148 = arith.divf %146, %147 : vector<8x1xf32>
    %149 = vector.broadcast %148 : vector<8x1xf32> to vector<8x32xf32>
    %150 = arith.subf %144, %149 : vector<8x32xf32>
    %151 = arith.mulf %150, %150 : vector<8x32xf32>
    %cst_47 = arith.constant dense<0.000000e+00> : vector<8xf32>
    %152 = vector.multi_reduction <add>, %151, %cst_47 [1] : vector<8x32xf32> to vector<8xf32>
    %153 = vector.shape_cast %152 : vector<8xf32> to vector<8x1xf32>
    %cst_48 = arith.constant 3.200000e+01 : f32
    %154 = vector.broadcast %cst_48 : f32 to vector<8x1xf32>
    %155 = arith.divf %153, %154 : vector<8x1xf32>
    %156 = vector.broadcast %148 : vector<8x1xf32> to vector<8x32xf32>
    %157 = arith.subf %144, %156 : vector<8x32xf32>
    %cst_49 = arith.constant 9.99999974E-6 : f32
    %158 = vector.broadcast %cst_49 : f32 to vector<8x1xf32>
    %159 = arith.addf %155, %158 : vector<8x1xf32>
    %160 = math.rsqrt %159 : vector<8x1xf32>
    %161 = vector.broadcast %160 : vector<8x1xf32> to vector<8x32xf32>
    %162 = arith.mulf %157, %161 : vector<8x32xf32>
    %163 = vector.broadcast %10 : vector<1x32xf32> to vector<8x32xf32>
    %164 = arith.mulf %162, %163 : vector<8x32xf32>
    %165 = vector.broadcast %11 : vector<1x32xf32> to vector<8x32xf32>
    %166 = arith.addf %164, %165 : vector<8x32xf32>
    %cst_50 = arith.constant dense<0.000000e+00> : vector<8x64xf32>
    %167 = tpu.matmul %166, %4, %cst_50 {dimension_numbers = #tpu.dot_dimension_numbers<[1], [0], [0], [1], [0, 0, 1, 1], [], []>} : vector<8x32xf32>, vector<32x64xf32>, vector<8x64xf32> -> vector<8x64xf32>
    %168 = vector.broadcast %8 : vector<1x64xf32> to vector<8x64xf32>
    %169 = arith.addf %167, %168 : vector<8x64xf32>
    %cst_51 = arith.constant 0.000000e+00 : f32
    %170 = vector.broadcast %cst_51 : f32 to vector<8x64xf32>
    %171 = arith.maximumf %169, %170 : vector<8x64xf32>
    %cst_52 = arith.constant dense<0.000000e+00> : vector<8x32xf32>
    %172 = tpu.matmul %171, %5, %cst_52 {dimension_numbers = #tpu.dot_dimension_numbers<[1], [0], [0], [1], [0, 0, 1, 1], [], []>} : vector<8x64xf32>, vector<64x32xf32>, vector<8x32xf32> -> vector<8x32xf32>
    %173 = vector.broadcast %9 : vector<1x32xf32> to vector<8x32xf32>
    %174 = arith.addf %172, %173 : vector<8x32xf32>
    %175 = arith.addf %174, %166 : vector<8x32xf32>
    %cst_53 = arith.constant dense<0.000000e+00> : vector<8xf32>
    %176 = vector.multi_reduction <add>, %175, %cst_53 [1] : vector<8x32xf32> to vector<8xf32>
    %177 = vector.shape_cast %176 : vector<8xf32> to vector<8x1xf32>
    %cst_54 = arith.constant 3.200000e+01 : f32
    %178 = vector.broadcast %cst_54 : f32 to vector<8x1xf32>
    %179 = arith.divf %177, %178 : vector<8x1xf32>
    %180 = vector.broadcast %179 : vector<8x1xf32> to vector<8x32xf32>
    %181 = arith.subf %175, %180 : vector<8x32xf32>
    %182 = arith.mulf %181, %181 : vector<8x32xf32>
    %cst_55 = arith.constant dense<0.000000e+00> : vector<8xf32>
    %183 = vector.multi_reduction <add>, %182, %cst_55 [1] : vector<8x32xf32> to vector<8xf32>
    %184 = vector.shape_cast %183 : vector<8xf32> to vector<8x1xf32>
    %cst_56 = arith.constant 3.200000e+01 : f32
    %185 = vector.broadcast %cst_56 : f32 to vector<8x1xf32>
    %186 = arith.divf %184, %185 : vector<8x1xf32>
    %187 = vector.broadcast %179 : vector<8x1xf32> to vector<8x32xf32>
    %188 = arith.subf %175, %187 : vector<8x32xf32>
    %cst_57 = arith.constant 9.99999974E-6 : f32
    %189 = vector.broadcast %cst_57 : f32 to vector<8x1xf32>
    %190 = arith.addf %186, %189 : vector<8x1xf32>
    %191 = math.rsqrt %190 : vector<8x1xf32>
    %192 = vector.broadcast %191 : vector<8x1xf32> to vector<8x32xf32>
    %193 = arith.mulf %188, %192 : vector<8x32xf32>
    %194 = vector.broadcast %12 : vector<1x32xf32> to vector<8x32xf32>
    %195 = arith.mulf %193, %194 : vector<8x32xf32>
    %196 = vector.broadcast %13 : vector<1x32xf32> to vector<8x32xf32>
    %197 = arith.addf %195, %196 : vector<8x32xf32>
    %c1 = arith.constant 1 : index
    %c0_58 = arith.constant 0 : index
    %c0_59 = arith.constant 0 : index
    %198 = vector.load %arg8[%c1, %c0_58, %c0_59] : memref<2x8x32xf32, #tpu.memory_space<vmem>>, vector<1x8x32xf32>
    %199 = vector.shape_cast %198 : vector<1x8x32xf32> to vector<8x32xf32>
    %200 = vector.shape_cast %197 : vector<8x32xf32> to vector<1x8x32xf32>
    tpu.vector_store %arg8[%c1, %c0_58, %c0_59], %200 {strides = array<i32>} : memref<2x8x32xf32, #tpu.memory_space<vmem>>, vector<1x8x32xf32>,
    return
  }
  func.func @transform_0(%arg0: i32) -> (i32, i32, i32) {
    %c0_i32 = arith.constant 0 : i32
    %c0_i32_0 = arith.constant 0 : i32
    %c0_i32_1 = arith.constant 0 : i32
    %c0_i32_2 = arith.constant 0 : i32
    return %c0_i32, %c0_i32_0, %c0_i32_1 : i32, i32, i32
  }
  func.func @transform_1(%arg0: i32) -> (i32, i32, i32) {
    %c0_i32 = arith.constant 0 : i32
    %c0_i32_0 = arith.constant 0 : i32
    %c0_i32_1 = arith.constant 0 : i32
    %c0_i32_2 = arith.constant 0 : i32
    return %c0_i32, %c0_i32_0, %c0_i32_1 : i32, i32, i32
  }
  func.func @transform_2(%arg0: i32) -> (i32, i32) {
    %c0_i32 = arith.constant 0 : i32
    %c0_i32_0 = arith.constant 0 : i32
    %c0_i32_1 = arith.constant 0 : i32
    return %c0_i32, %c0_i32_0 : i32, i32
  }
  func.func @transform_3(%arg0: i32) -> (i32, i32, i32) {
    %c0_i32 = arith.constant 0 : i32
    %c0_i32_0 = arith.constant 0 : i32
    %c0_i32_1 = arith.constant 0 : i32
    %c0_i32_2 = arith.constant 0 : i32
    return %c0_i32, %c0_i32_0, %c0_i32_1 : i32, i32, i32
  }
  func.func @transform_4(%arg0: i32) -> (i32, i32) {
    %c0_i32 = arith.constant 0 : i32
    %c0_i32_0 = arith.constant 0 : i32
    %c0_i32_1 = arith.constant 0 : i32
    return %c0_i32, %c0_i32_0 : i32, i32
  }
  func.func @transform_5(%arg0: i32) -> (i32, i32) {
    %c0_i32 = arith.constant 0 : i32
    %c0_i32_0 = arith.constant 0 : i32
    %c0_i32_1 = arith.constant 0 : i32
    return %c0_i32, %c0_i32_0 : i32, i32
  }
  func.func @transform_6(%arg0: i32) -> (i32, i32) {
    %c0_i32 = arith.constant 0 : i32
    %c0_i32_0 = arith.constant 0 : i32
    %c0_i32_1 = arith.constant 0 : i32
    return %c0_i32, %c0_i32_0 : i32, i32
  }
  func.func @transform_7(%arg0: i32) -> (i32, i32, i32) {
    %c0_i32 = arith.constant 0 : i32
    %c0_i32_0 = arith.constant 0 : i32
    %c0_i32_1 = arith.constant 0 : i32
    %c0_i32_2 = arith.constant 0 : i32
    return %c0_i32, %c0_i32_0, %c0_i32_1 : i32, i32, i32
  }
}

</mosaic_0001>

<bundles_post_ra>
// kernel: encoder_layer.1
= control target key start
LH: loop header
LB: loop body
LE: loop exit
PB: predicated region body
PF: predicated region fallthrough
CT: control target
= control target key end

     0   :  { %vm55_vm0 = vcmask 64512   ;;  %v2688_v1 = vmov 0.0   ;;  %vm2689_vm1 = vmmov 0   ;;  %s3110_s0 = inlined_call_operand.vmem [shape: f32[8,8,8], index: 0, kind: input, shape index: {}]   ;;  %s3111_s1 = inlined_call_operand.vmem [shape: f32[2,8,32], index: 1, kind: input, shape index: {}]   ;;  %s3112_s2 = inlined_call_operand.vmem [shape: f32[8,8], index: 2, kind: input, shape index: {}]   ;;  %s3113_s3 = inlined_call_operand.vmem [shape: f32[4,8,32], index: 3, kind: input, shape index: {}]   ;;  %s3114_s4 = inlined_call_operand.vmem [shape: f32[32,64], index: 4, kind: input, shape index: {}]   ;;  %s3115_s5 = inlined_call_operand.vmem [shape: f32[64,32], index: 5, kind: input, shape index: {}]   ;;  %s3116_s6 = inlined_call_operand.vmem [shape: f32[8,128], index: 6, kind: input, shape index: {}]   ;;  %s3117_s7 = inlined_call_operand.hbm [shape: f32[2,8,32], index: 7, kind: output, shape index: {}]  }
   0x1   :  { %v27_v0 = vld [vmem:[%s3110_s0] sm:$0xff]  ;;  %2441 = vmatprep.subr.mxu0 %v2688_v1  ;;  %2443 = vmatprep.mubr.msk.f32.mxu0 %vm2689_vm1, %v2688_v1  ;;  %v2742_v2 = vld [vmem:[%s3110_s0 + $0x18] sm:$0xff] }
   0x2   :  { %2442 = vmatpush3.xpose.msk.msra.mxu0 %vm55_vm0, %v27_v0  ;;  %2456 = vmatprep.subr.mxu1 %v2688_v1 }
   0x3   :  { %12 = vsyncpa [#allocation3], 0  ;;  %2446 = vmatprep.subr.mxu0 %v2688_v1  ;;  %v28_v3 = vld [vmem:[%s3110_s0 + $0x8] sm:$0xff]  ;;  %2457 = vmatpush3.xpose.msk.msra.mxu1 %vm55_vm0, %v2742_v2  ;;  %v2768_v5 = vld [vmem:[%s3110_s0 + $0x10] sm:$0xff]  ;;  %vm1630_vm2 = vcmask 261120   ;;  %vm1737_vm3 = vcmask 523264  }
   0x4   :  { %2458 = vmatprep.mubr.msk.f32.mxu1 %vm2689_vm1, %v2688_v1  ;;  %2466 = vmatprep.subr.mxu1 %v2688_v1  ;;  %v2759_v4 = vld [vmem:[%s3110_s0 + $0x28] sm:$0xff]  ;;  %v2781_v6 = vld [vmem:[%s3110_s0 + $0x38] sm:$0xff]  ;;  %v2791_v7 = vld [vmem:[%s3110_s0 + $0x20] sm:$0xff] }
   0x5   :  { %2444 = vmatmul.mubr.msk.f32.vlgmr.msra.gmra.mxu0 %vm55_vm0, %v27_v0  ;;  %v2810_v8 = vld [vmem:[%s3110_s0 + $0x30] sm:$0xff]  ;;  %v37_v9 = vld [vmem:[%s3112_s2] sm:$0xff] }
   0x6   :  { %2447 = vmatpush3.xpose.msk.msra.mxu0 %vm55_vm0, %v28_v3  ;;  %2448 = vmatprep.mubr.msk.f32.mxu0 %vm2689_vm1, %v2688_v1  ;;  %v648_v10 = vmul.f32 -1e-09, %v37_v9 }
   0x7   :  { %2451 = vmatprep.subr.mxu0 %v2688_v1  ;;  %2459 = vmatmul.mubr.msk.f32.vlgmr.msra.gmra.mxu1 %vm55_vm0, %v2742_v2 }
   0x8   :  { %2467 = vmatpush3.xpose.msk.msra.mxu1 %vm55_vm0, %v2759_v4  ;;  %2468 = vmatprep.mubr.msk.f32.mxu1 %vm2689_vm1, %v2688_v1 }
   0x9   :  { %2449 = vmatmul.mubr.msk.f32.vlgmr.msra.gmra.mxu0 %vm55_vm0, %v28_v3  ;;  %2476 = vmatprep.subr.mxu1 %v2688_v1 }
   0xa   :  { %2452 = vmatpush3.xpose.msk.msra.mxu0 %vm55_vm0, %v2768_v5  ;;  %2453 = vmatprep.mubr.msk.f32.mxu0 %vm2689_vm1, %v2688_v1 }
   0xb   :  { %2461 = vmatprep.subr.mxu0 %v2688_v1  ;;  %2469 = vmatmul.mubr.msk.f32.vlgmr.msra.gmra.mxu1 %vm55_vm0, %v2759_v4 }
   0xc   :  { %2477 = vmatpush3.xpose.msk.msra.mxu1 %vm55_vm0, %v2781_v6  ;;  %2478 = vmatprep.mubr.msk.f32.mxu1 %vm2689_vm1, %v2688_v1 }
   0xd   :  { %2454 = vmatmul.mubr.msk.f32.vlgmr.msra.gmra.mxu0 %vm55_vm0, %v2768_v5  ;;  %2486 = vmatprep.subr.mxu1 %v2688_v1 }
   0xe   :  { %2462 = vmatpush3.xpose.msk.msra.mxu0 %vm55_vm0, %v2791_v7  ;;  %2463 = vmatprep.mubr.msk.f32.mxu0 %vm2689_vm1, %v2688_v1 }
   0xf   :  { %2471 = vmatprep.subr.mxu0 %v2688_v1  ;;  %2479 = vmatmul.mubr.msk.f32.vlgmr.msra.gmra.mxu1 %vm55_vm0, %v2781_v6 }
  0x10   :  { %2487 = vmatpush3.msra.mxu1 %v28_v3  ;;  %2488 = vmatprep.mubr.msk.f32.mxu1 %vm2689_vm1, %v2688_v1 }
  0x11   :  { %2464 = vmatmul.mubr.msk.f32.vlgmr.msra.gmra.mxu0 %vm55_vm0, %v2791_v7  ;;  %2496 = vmatprep.subr.mxu1 %v2688_v1 }
  0x12   :  { %2472 = vmatpush3.xpose.msk.msra.mxu0 %vm55_vm0, %v2810_v8  ;;  %2473 = vmatprep.mubr.msk.f32.mxu0 %vm2689_vm1, %v2688_v1 }
  0x13   :  { %2481 = vmatprep.subr.mxu0 %v2688_v1 }
  0x15   :  { %2474 = vmatmul.mubr.msk.f32.vlgmr.msra.gmra.mxu0 %vm55_vm0, %v2810_v8 }
  0x16   :  { %2482 = vmatpush3.msra.mxu0 %v27_v0  ;;  %2483 = vmatprep.mubr.msk.f32.mxu0 %vm2689_vm1, %v2688_v1 }
  0x17   :  { %2491 = vmatprep.subr.mxu0 %v2688_v1 }
  0xc5   :  { %v125_v11 = vpop.f32.mrf.mxu0 }
  0xc6   :  { %v640_v12 = vmul.f32 0.35355338, %v125_v11 }
  0xc7   :  { %v2445_v13 = vpop.f32.mrf.mxu0  ;;  %v344_v14 = vpop.f32.mrf.mxu1 }
  0xc8   :  { %v649_v15 = vadd.f32 %v648_v10, %v640_v12  ;;  %v643_v22 = vmul.f32 0.35355338, %v344_v14 }
  0xc9   :  { %v198_v16 = vpop.f32.mrf.mxu0  ;;  %v2460_v17 = vpop.f32.mrf.mxu1 }
  0xca   :  { %v641_v18 = vmul.f32 0.35355338, %v198_v16  ;;  %v657_v19 = vsel %vm55_vm0, %v649_v15, -inf  ;;  %v652_v28 = vadd.f32 %v648_v10, %v643_v22 }
  0xcb   :  { %658 = vmax.xlane.f32.xlu0 %v657_v19  ;;  %v2450_v20 = vpop.f32.mrf.mxu0  ;;  %v490_v34 = vpop.f32.mrf.mxu1 }
  0xcc   :  { %v650_v21 = vadd.f32 %v648_v10, %v641_v18  ;;  %v666_v30 = vsel %vm55_vm0, %v652_v28, -inf  ;;  %v645_v36 = vmul.f32 0.35355338, %v490_v34 }
  0xcd   :  { %v271_v23 = vpop.f32.mrf.mxu0  ;;  %v2470_v39 = vpop.f32.mrf.mxu1 }
  0xce   :  { %v642_v24 = vmul.f32 0.35355338, %v271_v23  ;;  %v660_v25 = vsel %vm55_vm0, %v650_v21, -inf  ;;  %v2836_v42 = vadd.f32 %v648_v10, %v645_v36 }
  0xcf   :  { %661 = vmax.xlane.f32.xlu0 %v660_v25  ;;  %v2455_v26 = vpop.f32.mrf.mxu0  ;;  %v636_v41 = vpop.f32.mrf.mxu1 }
  0xd0   :  { %v651_v27 = vadd.f32 %v648_v10, %v642_v24  ;;  %v647_v43 = vmul.f32 0.35355338, %v636_v41  ;;  %v672_v11 = vsel %vm55_vm0, %v2836_v42, -inf }
  0xd1   :  { %v417_v31 = vpop.f32.mrf.mxu0  ;;  %v2480_v45 = vpop.f32.mrf.mxu1 }
  0xd2   :  { %v663_v29 = vsel %vm55_vm0, %v651_v27, -inf  ;;  %v644_v32 = vmul.f32 0.35355338, %v417_v31  ;;  %v2838_v46 = vadd.f32 %v648_v10, %v647_v43 }
  0xd3   :  { %664 = vmax.xlane.f32.xlu1 %v663_v29  ;;  %v2465_v33 = vpop.f32.mrf.mxu0 }
  0xd4   :  { %v653_v38 = vadd.f32 %v648_v10, %v644_v32  ;;  %v678_v13 = vsel %vm55_vm0, %v2838_v46, -inf }
  0xd5   :  { %v563_v35 = vpop.f32.mrf.mxu0 }
  0xd6   :  { %v646_v37 = vmul.f32 0.35355338, %v563_v35  ;;  %v669_v3 = vsel %vm55_vm0, %v653_v38, -inf }
  0xd7   :  { %667 = vmax.xlane.f32.xlu1 %v666_v30  ;;  %v2475_v40 = vpop.f32.mrf.mxu0 }
  0xd8   :  { %v655_v44 = vadd.f32 %v648_v10, %v646_v37 }
  0xda   :  { %v675_v12 = vsel %vm55_vm0, %v655_v44, -inf }
 0x154   :  { %v659_v47 = vpop.xlane.xlu0 %658 }
 0x155   :  { %v681_v48 = vsub.f32 %v649_v15, %v659_v47 }
 0x157   :  { %v689_v49 = vmul.f32 1.442695, %v681_v48 }
 0x158   :  { %v662_v50 = vpop.xlane.xlu0 %661 }
 0x159   :  { %2626 = vpow2.f32 %v689_v49  ;;  %v682_v51 = vsub.f32 %v650_v21, %v662_v50 }
 0x15b   :  { %v691_v52 = vmul.f32 1.442695, %v682_v51 }
 0x15c   :  { %v665_v53 = vpop.xlane.xlu1 %664 }
 0x15d   :  { %2628 = vpow2.f32 %v691_v52  ;;  %v683_v54 = vsub.f32 %v651_v27, %v665_v53  ;;  %v2884_v52 = vld [vmem:[%s3113_s3] sm:$0xff] }
 0x15f   :  { %v693_v55 = vmul.f32 1.442695, %v683_v54  ;;  %v2895_v54 = vld [vmem:[%s3113_s3 + $0x8] sm:$0xff] }
 0x160   :  { %v668_v56 = vpop.xlane.xlu1 %667 }
 0x161   :  { %2630 = vpow2.f32 %v693_v55  ;;  %v684_v57 = vsub.f32 %v652_v28, %v668_v56 }
 0x163   :  { %v695_v58 = vmul.f32 1.442695, %v684_v57  ;;  %v2918_v57 = vld [vmem:[%s3113_s3 + $0x18] sm:$0xff] }
 0x165   :  { %2632 = vpow2.f32 %v695_v58 }
 0x166   :  { %v2627_v59 = vpop.eup %2626 }
 0x167   :  { %v705_v60 = vsel %vm55_vm0, %v2627_v59, 0.0 }
 0x168   :  { %706 = vadd.xlane.f32.xlu0 %v705_v60 }
 0x16a   :  { %v2629_v61 = vpop.eup %2628 }
 0x16b   :  { %v708_v62 = vsel %vm55_vm0, %v2629_v61, 0.0 }
 0x16c   :  { %709 = vadd.xlane.f32.xlu1 %v708_v62 }
 0x16e   :  { %v2631_v63 = vpop.eup %2630 }
 0x16f   :  { %v711_v0 = vsel %vm55_vm0, %v2631_v63, 0.0 }
 0x170   :  { %712 = vadd.xlane.f32.xlu0 %v711_v0 }
 0x172   :  { %v2633_v9 = vpop.eup %2632 }
 0x173   :  { %v714_v10 = vsel %vm55_vm0, %v2633_v9, 0.0 }
 0x174   :  { %715 = vadd.xlane.f32.xlu1 %v714_v10  ;;  %670 = vmax.xlane.f32.xlu0 %v669_v3 }
 0x178   :  { %673 = vmax.xlane.f32.xlu1 %v672_v11  ;;  %676 = vmax.xlane.f32.xlu0 %v675_v12 }
 0x17c   :  { %679 = vmax.xlane.f32.xlu1 %v678_v13 }
 0x1f1   :  { %v707_v14 = vpop.xlane.xlu0 %706 }
 0x1f2   :  { %2634 = vrcp.f32 %v707_v14 }
 0x1f5   :  { %v710_v15 = vpop.xlane.xlu1 %709 }
 0x1f6   :  { %2636 = vrcp.f32 %v710_v15  ;;  %v1402_v15 = vlaneseq }
 0x1f9   :  { %v713_v16 = vpop.xlane.xlu0 %712 }
 0x1fa   :  { %2638 = vrcp.f32 %v713_v16  ;;  %v2940_v16 = vshrl.u32 %v1402_v15, 7 }
 0x1fd   :  { %v716_v17 = vpop.xlane.xlu1 %715  ;;  %v671_v18 = vpop.xlane.xlu0 %670 }
 0x1fe   :  { %2640 = vrcp.f32 %v716_v17  ;;  %v685_v19 = vsub.f32 %v653_v38, %v671_v18  ;;  %v1404_v17 = vsub.s32 0, %v2940_v16  ;;  %v2946_v18 = vld [vmem:[%s3116_s6] sm:$0xff] }
 0x1ff   :  { %v2635_v20 = vpop.eup %2634 }
 0x200   :  { %v697_v21 = vmul.f32 1.442695, %v685_v19  ;;  %v737_v22 = vmul.f32 %v2635_v20, %v2627_v59 }
 0x201   :  { %v674_v23 = vpop.xlane.xlu1 %673  ;;  %v677_v24 = vpop.xlane.xlu0 %676 }
 0x202   :  { %2642 = vpow2.f32 %v697_v21  ;;  %v686_v25 = vsub.f32 %v2836_v42, %v674_v23  ;;  %v687_v26 = vsub.f32 %v655_v44, %v677_v24  ;;  %2484 = vmatmul.mubr.msk.f32.vlgmr.msra.gmra.mxu0 %vm55_vm0, %v737_v22  ;;  %v2949_v21 = vrot.slane %v2946_v18, %v1404_v17 }
 0x203   :  { %v2637_v27 = vpop.eup %2636  ;;  %2492 = vmatpush3.msra.mxu0 %v2768_v5  ;;  %2493 = vmatprep.mubr.msk.f32.mxu0 %vm2689_vm1, %v2688_v1 }
 0x204   :  { %v699_v28 = vmul.f32 1.442695, %v686_v25  ;;  %v701_v29 = vmul.f32 1.442695, %v687_v26  ;;  %v738_v30 = vmul.f32 %v2637_v27, %v2629_v61  ;;  %2501 = vmatprep.subr.mxu0 %v2688_v1 }
 0x205   :  { %v680_v31 = vpop.xlane.xlu1 %679 }
 0x206   :  { %2644 = vpow2.f32 %v699_v28  ;;  %v688_v32 = vsub.f32 %v2838_v46, %v680_v31  ;;  %2489 = vmatmul.mubr.msk.f32.vlgmr.msra.gmra.mxu1 %vm55_vm0, %v738_v30  ;;  %v35_v30 = vld [vmem:[%s3111_s1] sm:$0xff] }
 0x207   :  { %v2639_v33 = vpop.eup %2638  ;;  %2646 = vpow2.f32 %v701_v29  ;;  %2497 = vmatpush3.msra.mxu1 %v2742_v2  ;;  %2498 = vmatprep.mubr.msk.f32.mxu1 %vm2689_vm1, %v2688_v1 }
 0x208   :  { %v703_v5 = vmul.f32 1.442695, %v688_v32  ;;  %v739_v34 = vmul.f32 %v2639_v33, %v2631_v63  ;;  %2506 = vmatprep.subr.mxu1 %v2688_v1 }
 0x20a   :  { %2648 = vpow2.f32 %v703_v5  ;;  %2494 = vmatmul.mubr.msk.f32.vlgmr.msra.gmra.mxu0 %vm55_vm0, %v739_v34 }
 0x20b   :  { %v2641_v35 = vpop.eup %2640  ;;  %2502 = vmatpush3.msra.mxu0 %v2791_v7  ;;  %2503 = vmatprep.mubr.msk.f32.mxu0 %vm2689_vm1, %v2688_v1 }
 0x20c   :  { %v740_v36 = vmul.f32 %v2641_v35, %v2633_v9  ;;  %2511 = vmatprep.subr.mxu0 %v2688_v1 }
 0x20e   :  { %2499 = vmatmul.mubr.msk.f32.vlgmr.msra.gmra.mxu1 %vm55_vm0, %v740_v36 }
 0x20f   :  { %v2643_v2 = vpop.eup %2642  ;;  %2507 = vmatpush3.msra.mxu1 %v2759_v4  ;;  %2508 = vmatprep.mubr.msk.f32.mxu1 %vm2689_vm1, %v2688_v1 }
 0x210   :  { %v717_v37 = vsel %vm55_vm0, %v2643_v2, 0.0  ;;  %2516 = vmatprep.subr.mxu1 %v2688_v1 }
 0x211   :  { %718 = vadd.xlane.f32.xlu0 %v717_v37 }
 0x213   :  { %v2645_v7 = vpop.eup %2644 }
 0x214   :  { %v2647_v38 = vpop.eup %2646  ;;  %v720_v39 = vsel %vm55_vm0, %v2645_v7, 0.0 }
 0x215   :  { %721 = vadd.xlane.f32.xlu1 %v720_v39  ;;  %v723_v40 = vsel %vm55_vm0, %v2647_v38, 0.0  ;;  %v43_v39 = vld [vmem:[%s3114_s4 + $0x8] sm:$0xff] }
 0x216   :  { %724 = vadd.xlane.f32.xlu0 %v723_v40  ;;  %v42_v40 = vld [vmem:[%s3114_s4] sm:$0xff] }
 0x217   :  { %v2649_v41 = vpop.eup %2648 }
 0x218   :  { %v726_v42 = vsel %vm55_vm0, %v2649_v41, 0.0 }
 0x219   :  { %727 = vadd.xlane.f32.xlu1 %v726_v42  ;;  %v2981_v42 = vld [vmem:[%s3115_s5 + $0x30] sm:$0xff] }
 0x29a   :  { %v719_v4 = vpop.xlane.xlu0 %718 }
 0x29b   :  { %2650 = vrcp.f32 %v719_v4  ;;  %v2988_v4 = vld [vmem:[%s3115_s5 + $0x28] sm:$0xff] }
 0x29e   :  { %v722_v43 = vpop.xlane.xlu1 %721 }
 0x29f   :  { %2652 = vrcp.f32 %v722_v43  ;;  %v725_v44 = vpop.xlane.xlu0 %724  ;;  %v2995_v43 = vld [vmem:[%s3115_s5 + $0x20] sm:$0xff] }
 0x2a0   :  { %2654 = vrcp.f32 %v725_v44  ;;  %v3002_v44 = vld [vmem:[%s3115_s5 + $0x18] sm:$0xff] }
 0x2a2   :  { %v728_v45 = vpop.xlane.xlu1 %727 }
 0x2a3   :  { %2656 = vrcp.f32 %v728_v45 }
 0x2a8   :  { %v2651_v46 = vpop.eup %2650 }
 0x2a9   :  { %v741_v47 = vmul.f32 %v2651_v46, %v2643_v2 }
 0x2ab   :  { %2504 = vmatmul.mubr.msk.f32.vlgmr.msra.gmra.mxu0 %vm55_vm0, %v741_v47 }
 0x2ac   :  { %v2653_v48 = vpop.eup %2652  ;;  %2512 = vmatpush3.msra.mxu0 %v2810_v8  ;;  %2513 = vmatprep.mubr.msk.f32.mxu0 %vm2689_vm1, %v2688_v1 }
 0x2ad   :  { %v2655_v49 = vpop.eup %2654  ;;  %v742_v50 = vmul.f32 %v2653_v48, %v2645_v7  ;;  %2521 = vmatprep.subr.mxu0 %v2688_v1  ;;  %v45_v7 = vld [vmem:[%s3114_s4 + $0x18] sm:$0xff]  ;;  %v1647_v48 = vsub.s32 3, %v2940_v16 }
 0x2ae   :  { %v743_v51 = vmul.f32 %v2655_v49, %v2647_v38  ;;  %v44_v38 = vld [vmem:[%s3114_s4 + $0x10] sm:$0xff]  ;;  %v1652_v49 = vsub.s32 4, %v2940_v16 }
 0x2af   :  { %2509 = vmatmul.mubr.msk.f32.vlgmr.msra.gmra.mxu1 %vm55_vm0, %v742_v50  ;;  %v3011_v50 = vrot.slane %v2946_v18, %v1647_v48 }
 0x2b0   :  { %v2657_v53 = vpop.eup %2656  ;;  %2514 = vmatmul.mubr.msk.f32.vlgmr.msra.gmra.mxu0 %vm55_vm0, %v743_v51  ;;  %2517 = vmatpush3.msra.mxu1 %v2781_v6  ;;  %v2909_v6 = vld [vmem:[%s3113_s3 + $0x10] sm:$0xff] }
 0x2b1   :  { %2518 = vmatprep.mubr.msk.f32.mxu1 %vm2689_vm1, %v2688_v1  ;;  %v744_v8 = vmul.f32 %v2657_v53, %v2649_v41  ;;  %2522 = vmatpush3.msra.mxu0 %v2884_v52  ;;  %v2976_v41 = vld [vmem:[%s3115_s5 + $0x38] sm:$0xff] }
 0x2b2   :  { %2523 = vmatprep.mubr.msk.f32.mxu0 %vm2689_vm1, %v2688_v1  ;;  %2526 = vmatprep.subr.mxu1 %v2688_v1 }
 0x2b3   :  { %2519 = vmatmul.mubr.msk.f32.vlgmr.msra.gmra.mxu1 %vm55_vm0, %v744_v8  ;;  %2531 = vmatprep.subr.mxu0 %v2688_v1  ;;  %v3014_v8 = vrot.slane %v2946_v18, %v1652_v49 }
 0x2b4   :  { %2527 = vmatpush3.msra.mxu1 %v2895_v54  ;;  %2528 = vmatprep.mubr.msk.f32.mxu1 %vm2689_vm1, %v2688_v1 }
 0x2b5   :  { %2536 = vmatprep.subr.mxu1 %v2688_v1 }
 0x2c2   :  { %v814_v55 = vpop.f32.mrf.mxu0 }
 0x2c3   :  { %2524 = vmatmul.mubr.msk.f32.vlgmr.msra.gmra.mxu0 %vm55_vm0, %v814_v55 }
 0x2c4   :  { %v2485_v56 = vpop.f32.mrf.mxu0  ;;  %2532 = vmatpush3.msra.mxu0 %v2909_v6  ;;  %2533 = vmatprep.mubr.msk.f32.mxu0 %vm2689_vm1, %v2688_v1 }
 0x2c5   :  { %2541 = vmatprep.subr.mxu0 %v2688_v1 }
 0x2c6   :  { %v887_v58 = vpop.f32.mrf.mxu1 }
 0x2c7   :  { %2529 = vmatmul.mubr.msk.f32.vlgmr.msra.gmra.mxu1 %vm55_vm0, %v887_v58  ;;  %v1657_v58 = vsub.s32 1, %v2940_v16 }
 0x2c8   :  { %v2490_v59 = vpop.f32.mrf.mxu1  ;;  %2537 = vmatpush3.msra.mxu1 %v2918_v57  ;;  %2538 = vmatprep.mubr.msk.f32.mxu1 %vm2689_vm1, %v2688_v1 }
 0x2c9   :  { %2552 = vmatprep.subr.mxu1 %v2688_v1  ;;  %v3059_v59 = vrot.slane %v2946_v18, %v1657_v58 }
 0x2ca   :  { %v960_v60 = vpop.f32.mrf.mxu0 }
 0x2cb   :  { %2534 = vmatmul.mubr.msk.f32.vlgmr.msra.gmra.mxu0 %vm55_vm0, %v960_v60 }
 0x2cc   :  { %v2495_v61 = vpop.f32.mrf.mxu0  ;;  %2549 = vmatprep.mubr.msk.f32.mxu0 %vm2689_vm1, %v2688_v1  ;;  %2542 = vmatpush3.msra.mxu0 %v45_v7 }
 0x2cd   :  { %2543 = vmatprep.subr.mxu0 %v2688_v1 }
 0x2ce   :  { %v1033_v62 = vpop.f32.mrf.mxu1  ;;  %2544 = vmatpush3.msra.mxu0 %v44_v38 }
 0x2cf   :  { %2539 = vmatmul.mubr.msk.f32.vlgmr.msra.gmra.mxu1 %vm55_vm0, %v1033_v62  ;;  %2545 = vmatprep.subr.mxu0 %v2688_v1 }
 0x2d0   :  { %v2500_v63 = vpop.f32.mrf.mxu1  ;;  %2568 = vmatprep.mubr.msk.f32.mxu1 %vm2689_vm1, %v2688_v1  ;;  %2546 = vmatpush3.msra.mxu0 %v43_v39 }
 0x2d1   :  { %2547 = vmatprep.subr.mxu0 %v2688_v1  ;;  %2553 = vmatpush3.msra.mxu1 %v2976_v41 }
 0x2d2   :  { %2548 = vmatpush3.msra.mxu0 %v42_v40  ;;  %2554 = vmatprep.subr.mxu1 %v2688_v1 }
 0x2d3   :  { %2571 = vmatprep.subr.mxu0 %v2688_v1  ;;  %2555 = vmatpush3.msra.mxu1 %v2981_v42 }
 0x2d4   :  { %2556 = vmatprep.subr.mxu1 %v2688_v1 }
 0x2d5   :  { %2557 = vmatpush3.msra.mxu1 %v2988_v4 }
 0x2d6   :  { %2558 = vmatprep.subr.mxu1 %v2688_v1 }
 0x2d7   :  { %2559 = vmatpush3.msra.mxu1 %v2995_v43 }
 0x2d8   :  { %2560 = vmatprep.subr.mxu1 %v2688_v1 }
 0x2d9   :  { %2561 = vmatpush3.msra.mxu1 %v3002_v44 }
 0x2da   :  { %2562 = vmatprep.subr.mxu1 %v2688_v1 }
 0x36b   :  { %v2932_v0 = vpop.f32.mrf.mxu0 }
 0x36d   :  { %v2505_v3 = vpop.f32.mrf.mxu0 }
 0x36f   :  { %v2934_v9 = vpop.f32.mrf.mxu1 }
 0x370   :  { %v2936_v10 = vpop.f32.mrf.mxu0 }
 0x371   :  { %v2510_v11 = vpop.f32.mrf.mxu1 }
 0x372   :  { %v2515_v12 = vpop.f32.mrf.mxu0 }
 0x373   :  { %v2938_v13 = vpop.f32.mrf.mxu1 }
 0x375   :  { %v2520_v14 = vpop.f32.mrf.mxu1 }
 0x383   :  { %v1398_v19 = vpop.f32.mrf.mxu0 }
 0x384   :  { %v1406_v24 = vadd.f32 %v2949_v21, %v1398_v19 }
 0x385   :  { %v2525_v20 = vpop.f32.mrf.mxu0 }
 0x387   :  { %v1476_v22 = vpop.f32.mrf.mxu1 }
 0x388   :  { %v1480_v26 = vadd.f32 %v1476_v22, %v1406_v24  ;;  %v36_v22 = vld [vmem:[%s3111_s1 + $0x8] sm:$0xff]  ;;  %s2690_s1 = smov [#allocation2]  }
 0x389   :  { %v2530_v23 = vpop.f32.mrf.mxu1  ;;  %s2318_s25 = sshll.u32 %s2690_s1, 4  ;;  %s2319_s25 = int_to_ptr.vmem [resolvable:$true] %s2318_s25 }
 0x38a   :  { %s2666_s26 = scalar_lea.vmem %s2319_s25, 256  ;;  %p2671_p1 = scmp.lt.s32.totalorder %s2319_s25, %s2319_s25 }
 0x38b   :  { %v1550_v25 = vpop.f32.mrf.mxu0  ;;  %p2667_p0 = scmp.ne.s32.totalorder %s2319_s25, %s2666_s26  ;;  %p2672_p2 = scmp.lt.s32.totalorder %s2666_s26, %s2666_s26 }
 0x38c   :  { %v1554_v28 = vadd.f32 %v1550_v25, %v1480_v26 }
 0x38d   :  { %v2535_v27 = vpop.f32.mrf.mxu0  ;;  %p2673_p3 = por %p2672_p2, %p2671_p1 }
 0x38f   :  { %v1624_v29 = vpop.f32.mrf.mxu1  ;;  %p2674_p4 = pnand %p2673_p3, %p2667_p0 }
 0x390   :  { %v1628_v31 = vadd.f32 %v1624_v29, %v1554_v28 }
 0x391   :  { %v2540_v32 = vpop.f32.mrf.mxu1 }
 0x392   :  { %v1629_v33 = vadd.f32 %v1628_v31, %v35_v30 }
 0x394   :  { %v1631_v5 = vsel %vm1630_vm2, %v1629_v33, 0.0 }
 0x395   :  { %1632 = vadd.xlane.f32.xlu0 %v1631_v5 }
 0x41e   :  { %v1633_v34 = vpop.xlane.xlu0 %1632 }
 0x41f   :  { %v1635_v35 = vmul.f32 0.03125, %v1633_v34 }
 0x421   :  { %v1636_v36 = vsub.f32 %v1629_v33, %v1635_v35 }
 0x423   :  { %v1637_v2 = vmul.f32 %v1636_v36, %v1636_v36 }
 0x425   :  { %v1638_v37 = vsel %vm1630_vm2, %v1637_v2, 0.0 }
 0x426   :  { %1639 = vadd.xlane.f32.xlu1 %v1638_v37 }
 0x4af   :  { %v1640_v45 = vpop.xlane.xlu1 %1639 }
 0x4b0   :  { %v1641_v46 = vmul.f32 0.03125, %v1640_v45 }
 0x4b2   :  { %v1642_v47 = vadd.f32 1e-05, %v1641_v46 }
 0x4b4   :  { %2658 = vrsqrt.f32 %v1642_v47 }
 0x4c1   :  { %v2659_v51 = vpop.eup %2658 }
 0x4c2   :  { %v1644_v53 = vmul.f32 %v2659_v51, %v1636_v36 }
 0x4c4   :  { %v1649_v55 = vmul.f32 %v3011_v50, %v1644_v53 }
 0x4c6   :  { %v3018_v56 = vadd.f32 %v3014_v8, %v1649_v55 }
 0x4c8   :  { %2550 = vmatmul.mubr.msk.f32.vlgmr.msra.gmra.mxu0 %vm1630_vm2, %v3018_v56 }
 0x4c9   :  { %2572 = vmatpush3.msra.mxu0 %v2884_v52  ;;  %2573 = vmatprep.mubr.msk.f32.mxu0 %vm2689_vm1, %v2688_v1  ;;  %v48_v52 = vld [vmem:[%s3115_s5 + $0x10] sm:$0xff] }
 0x4ca   :  { %2576 = vmatprep.subr.mxu0 %v2688_v1  ;;  %2563 = vmatpush3.msra.mxu1 %v48_v52 }
 0x4cb   :  { %2564 = vmatprep.subr.mxu1 %v2688_v1 }
 0x4cc   :  { %2574 = vmatmul.mubr.msk.f32.vlgmr.msra.gmra.mxu0 %vm55_vm0, %v2932_v0 }
 0x4cd   :  { %2577 = vmatpush3.msra.mxu0 %v2895_v54  ;;  %2578 = vmatprep.mubr.msk.f32.mxu0 %vm2689_vm1, %v2688_v1  ;;  %v47_v54 = vld [vmem:[%s3115_s5 + $0x8] sm:$0xff] }
 0x4ce   :  { %2581 = vmatprep.subr.mxu0 %v2688_v1  ;;  %2565 = vmatpush3.msra.mxu1 %v47_v54 }
 0x4cf   :  { %2566 = vmatprep.subr.mxu1 %v2688_v1 }
 0x4d0   :  { %2579 = vmatmul.mubr.msk.f32.vlgmr.msra.gmra.mxu0 %vm55_vm0, %v2934_v9 }
 0x4d1   :  { %2582 = vmatpush3.msra.mxu0 %v2909_v6  ;;  %2583 = vmatprep.mubr.msk.f32.mxu0 %vm2689_vm1, %v2688_v1  ;;  %v46_v6 = vld [vmem:[%s3115_s5] sm:$0xff] }
 0x4d2   :  { %2591 = vmatprep.subr.mxu0 %v2688_v1  ;;  %2567 = vmatpush3.msra.mxu1 %v46_v6 }
 0x4d3   :  { %2586 = vmatprep.subr.mxu1 %v2688_v1 }
 0x4d4   :  { %2584 = vmatmul.mubr.msk.f32.vlgmr.msra.gmra.mxu0 %vm55_vm0, %v2936_v10 }
 0x4d5   :  { %2592 = vmatpush3.msra.mxu0 %v45_v7  ;;  %2599 = vmatprep.mubr.msk.f32.mxu0 %vm2689_vm1, %v2688_v1 }
 0x4d6   :  { %2593 = vmatprep.subr.mxu0 %v2688_v1 }
 0x4d7   :  { %2594 = vmatpush3.msra.mxu0 %v44_v38 }
 0x4d8   :  { %2595 = vmatprep.subr.mxu0 %v2688_v1 }
 0x4d9   :  { %2596 = vmatpush3.msra.mxu0 %v43_v39 }
 0x4da   :  { %2597 = vmatprep.subr.mxu0 %v2688_v1 }
 0x4db   :  { %2598 = vmatpush3.msra.mxu0 %v42_v40 }
 0x588   :  { %v1728_v60 = vpop.f32.mrf.mxu0 }
 0x589   :  { %v1729_v61 = vadd.f32 %v1728_v60, %v3059_v59 }
 0x58a   :  { %v2551_v62 = vpop.f32.mrf.mxu0 }
 0x58b   :  { %v1732_v63 = vmax.f32 %v1729_v61, 0.0 }
 0x58c   :  { %v1905_v0 = vpop.f32.mrf.mxu0 }
 0x58d   :  { %2569 = vmatmul.mubr.msk.f32.vlgmr.msra.gmra.mxu1 %vm1737_vm3, %v1732_v63  ;;  %v1909_v9 = vadd.f32 %v1905_v0, %v2949_v21 }
 0x58e   :  { %v2575_v3 = vpop.f32.mrf.mxu0  ;;  %2587 = vmatpush3.msra.mxu1 %v2918_v57  ;;  %2588 = vmatprep.mubr.msk.f32.mxu1 %vm2689_vm1, %v2688_v1 }
 0x58f   :  { %2602 = vmatprep.subr.mxu1 %v2688_v1 }
 0x590   :  { %v1979_v10 = vpop.f32.mrf.mxu0 }
 0x591   :  { %v1983_v11 = vadd.f32 %v1979_v10, %v1909_v9  ;;  %2589 = vmatmul.mubr.msk.f32.vlgmr.msra.gmra.mxu1 %vm55_vm0, %v2938_v13  ;;  %v1735_v13 = vsub.s32 2, %v2940_v16 }
 0x592   :  { %v2580_v12 = vpop.f32.mrf.mxu0  ;;  %2603 = vmatpush3.msra.mxu1 %v2976_v41  ;;  %2618 = vmatprep.mubr.msk.f32.mxu1 %vm2689_vm1, %v2688_v1 }
 0x593   :  { %2604 = vmatprep.subr.mxu1 %v2688_v1  ;;  %v1736_v19 = vrot.slane %v2946_v18, %v1735_v13 }
 0x594   :  { %v2053_v57 = vpop.f32.mrf.mxu0  ;;  %2605 = vmatpush3.msra.mxu1 %v2981_v42  ;;  %v1827_v42 = vsub.s32 5, %v2940_v16 }
 0x595   :  { %v2057_v14 = vadd.f32 %v2053_v57, %v1983_v11  ;;  %2606 = vmatprep.subr.mxu1 %v2688_v1 }
 0x596   :  { %v2585_v15 = vpop.f32.mrf.mxu0  ;;  %2607 = vmatpush3.msra.mxu1 %v2988_v4  ;;  %v1828_v46 = vrot.slane %v2946_v18, %v1827_v42 }
 0x597   :  { %2608 = vmatprep.subr.mxu1 %v2688_v1 }
 0x598   :  { %2609 = vmatpush3.msra.mxu1 %v2995_v43 }
 0x599   :  { %2610 = vmatprep.subr.mxu1 %v2688_v1 }
 0x59a   :  { %2611 = vmatpush3.msra.mxu1 %v3002_v44  ;;  %v1832_v44 = vsub.s32 6, %v2940_v16 }
 0x59b   :  { %2612 = vmatprep.subr.mxu1 %v2688_v1 }
 0x59c   :  { %2613 = vmatpush3.msra.mxu1 %v48_v52  ;;  %v1833_v51 = vrot.slane %v2946_v18, %v1832_v44 }
 0x59d   :  { %2614 = vmatprep.subr.mxu1 %v2688_v1 }
 0x59e   :  { %2615 = vmatpush3.msra.mxu1 %v47_v54 }
 0x59f   :  { %2616 = vmatprep.subr.mxu1 %v2688_v1 }
 0x5a0   :  { %2617 = vmatpush3.msra.mxu1 %v46_v6 }
 0x64d   :  { %v1807_v17 = vpop.f32.mrf.mxu1 }
 0x64e   :  { %v1808_v23 = vadd.f32 %v1807_v17, %v1736_v19 }
 0x64f   :  { %v2570_v20 = vpop.f32.mrf.mxu1 }
 0x650   :  { %v1811_v1 = vadd.f32 %v1808_v23, %v3018_v56 }
 0x651   :  { %v2127_v21 = vpop.f32.mrf.mxu1 }
 0x652   :  { %v2131_v24 = vadd.f32 %v2127_v21, %v2057_v14  ;;  %v1812_v28 = vsel %vm1630_vm2, %v1811_v1, 0.0 }
 0x653   :  { %v2590_v25 = vpop.f32.mrf.mxu1 }
 0x654   :  { %v2132_v26 = vadd.f32 %v2131_v24, %v36_v22 }
 0x656   :  { %v2133_v27 = vsel %vm1630_vm2, %v2132_v26, 0.0 }
 0x657   :  { %2134 = vadd.xlane.f32.xlu0 %v2133_v27 }
 0x65b   :  { %1813 = vadd.xlane.f32.xlu0 %v1812_v28 }
 0x6e0   :  { %v2135_v29 = vpop.xlane.xlu0 %2134 }
 0x6e1   :  { %v2136_v30 = vmul.f32 0.03125, %v2135_v29 }
 0x6e3   :  { %v2137_v31 = vsub.f32 %v2132_v26, %v2136_v30 }
 0x6e4   :  { %v1814_v32 = vpop.xlane.xlu0 %1813 }
 0x6e5   :  { %v1815_v33 = vmul.f32 0.03125, %v1814_v32  ;;  %v2138_v5 = vmul.f32 %v2137_v31, %v2137_v31 }
 0x6e7   :  { %v1816_v34 = vsub.f32 %v1811_v1, %v1815_v33  ;;  %v2139_v35 = vsel %vm1630_vm2, %v2138_v5, 0.0 }
 0x6e8   :  { %2140 = vadd.xlane.f32.xlu1 %v2139_v35 }
 0x6e9   :  { %v1817_v36 = vmul.f32 %v1816_v34, %v1816_v34 }
 0x6eb   :  { %v1818_v2 = vsel %vm1630_vm2, %v1817_v36, 0.0 }
 0x6ec   :  { %1819 = vadd.xlane.f32.xlu0 %v1818_v2 }
 0x771   :  { %v2141_v37 = vpop.xlane.xlu1 %2140 }
 0x772   :  { %v2142_v7 = vmul.f32 0.03125, %v2141_v37 }
 0x774   :  { %v2143_v38 = vadd.f32 1e-05, %v2142_v7 }
 0x775   :  { %v1820_v39 = vpop.xlane.xlu0 %1819 }
 0x776   :  { %2660 = vrsqrt.f32 %v2143_v38  ;;  %v1821_v40 = vmul.f32 0.03125, %v1820_v39 }
 0x778   :  { %v1822_v41 = vadd.f32 1e-05, %v1821_v40 }
 0x77a   :  { %2662 = vrsqrt.f32 %v1822_v41 }
 0x783   :  { %v2661_v4 = vpop.eup %2660 }
 0x784   :  { %v2145_v43 = vmul.f32 %v2661_v4, %v2137_v31 }
 0x786   :  { %v2146_v45 = vmul.f32 %v2145_v43, %v3011_v50 }
 0x787   :  { %v2663_v47 = vpop.eup %2662 }
 0x788   :  { %v2147_v48 = vadd.f32 %v2146_v45, %v3014_v8  ;;  %v1824_v49 = vmul.f32 %v2663_v47, %v1816_v34 }
 0x78a   :  { %2600 = vmatmul.mubr.msk.f32.vlgmr.msra.gmra.mxu0 %vm1630_vm2, %v2147_v48  ;;  %v1829_v53 = vmul.f32 %v1828_v46, %v1824_v49 }
 0x78c   :  { %v1834_v55 = vadd.f32 %v1833_v51, %v1829_v53 }
 0x78e   :  { %1835 = vst.msk [vmem:[#allocation2] sm:$0xff] %vm1630_vm2, %v1834_v55 }
 0x84a   :  { %v2217_v56 = vpop.f32.mrf.mxu0 }
 0x84b   :  { %v2218_v52 = vadd.f32 %v2217_v56, %v3059_v59 }
 0x84c   :  { %v2601_v16 = vpop.f32.mrf.mxu0 }
 0x84d   :  { %v2221_v54 = vmax.f32 %v2218_v52, 0.0 }
 0x84f   :  { %2619 = vmatmul.mubr.msk.f32.vlgmr.msra.gmra.mxu1 %vm1737_vm3, %v2221_v54 }
 0x90f   :  { %v2291_v50 = vpop.f32.mrf.mxu1 }
 0x910   :  { %v2292_v6 = vadd.f32 %v2291_v50, %v1736_v19 }
 0x911   :  { %v2620_v58 = vpop.f32.mrf.mxu1 }
 0x912   :  { %v2295_v8 = vadd.f32 %v2292_v6, %v2147_v48 }
 0x914   :  { %v2296_v60 = vsel %vm1630_vm2, %v2295_v8, 0.0 }
 0x915   :  { %2297 = vadd.xlane.f32.xlu1 %v2296_v60 }
 0x99e   :  { %v2298_v18 = vpop.xlane.xlu1 %2297 }
 0x99f   :  { %v2299_v61 = vmul.f32 0.03125, %v2298_v18 }
 0x9a1   :  { %v2300_v62 = vsub.f32 %v2295_v8, %v2299_v61 }
 0x9a3   :  { %v2301_v63 = vmul.f32 %v2300_v62, %v2300_v62 }
 0x9a5   :  { %v2302_v0 = vsel %vm1630_vm2, %v2301_v63, 0.0 }
 0x9a6   :  { %2303 = vadd.xlane.f32.xlu1 %v2302_v0 }
 0xa2f   :  { %v2304_v3 = vpop.xlane.xlu1 %2303 }
 0xa30   :  { %v2305_v59 = vmul.f32 0.03125, %v2304_v3 }
 0xa32   :  { %v2306_v9 = vadd.f32 1e-05, %v2305_v59 }
 0xa34   :  { %2664 = vrsqrt.f32 %v2306_v9 }
 0xa41   :  { %v2665_v10 = vpop.eup %2664 }
 0xa42   :  { %v2308_v11 = vmul.f32 %v2665_v10, %v2300_v62 }
 0xa44   :  { %v2309_v12 = vmul.f32 %v2308_v11, %v1828_v46 }
 0xa46   :  { %v2310_v57 = vadd.f32 %v2309_v12, %v1833_v51 }
 0xa48   :  { %2312 = vst.msk [vmem:[#allocation2 + $0x8] sm:$0xff] %vm1630_vm2, %v2310_v57 }
 0xa49   :  { %2677 = shalt.err (!%p2674_p4)
}
 0xa4a   :  { %s2691_s27 = smov 128   ;;  %s2692_s6 = smov 8  }
 0xa4b   :  { %2324 = dma.vmem_to_hbm [thread:$0]  %s2319_s25, 256, %s3117_s7, [#allocation3], %s2691_s27, %s2691_s27, %s2692_s6  }
 0xa4c   :  { %2686 = dma.done.wait [#allocation3], 256  }
 0xa4d   :  { %2687 = vsyncadd [#allocation3], 4294967040 }
 0xa4e   :  { %2328 = vsyncpa [#allocation3], 1 }

</bundles_post_ra>
